<compile_context>
chip_gen: v6e
topology: v6e:2x2x1
jax: 0.10.0
libtpu: 0.0.40
codegen_flags: <defaults>
</compile_context>

<pallas_src>
import functools

import jax
import jax.numpy as jnp
from jax import lax
from jax.experimental import pallas as pl
from jax.experimental.pallas import tpu as pltpu

_LANE = 128
_SUBLANE = 8
_BETA = 1.0            # torch smooth_l1_loss default beta
_BIG_TILE_ROWS = 8192  # 4 MiB per f32 block, 2 MiB bf16
_CHUNK_ROWS = 512      # in-kernel compute chunk (bounds f32 temporaries)
# TODO(synk): beta is fixed at torch's default 1.0 (the module never exposes it).


def _huber(x, y):
    """Branchless elementwise smooth-L1 (Huber, beta=1.0) in f32."""
    d = x - y
    ad = jnp.abs(d)
    q = jnp.minimum(ad, _BETA)
    return q * (ad - 0.5 * q)  # == 0.5*d^2 if |d|<beta else |d|-0.5*beta


def _tensorcores_per_chip():
    """Best-effort TensorCore-per-chip count; defaults to 1 (safe everywhere)."""
    try:
        info = pltpu.get_tpu_info()
    except Exception:
        return 1
    for name in ("num_cores", "num_tensorcores", "tensorcores_per_chip",
                 "core_count", "num_tensor_cores"):
        v = getattr(info, name, None)
        if isinstance(v, int) and v >= 1:
            return v
    return 1


def _huber_sum_kernel(x_ref, y_ref, out_ref, *, rows, tile_rows, chunk_rows,
                      blocks_per_core, need_mask):
    c = pl.program_id(0)   # core-split axis ("parallel")
    i = pl.program_id(1)   # reduction axis  ("arbitrary")

    @pl.when(i == 0)
    def _():
        out_ref[...] = jnp.zeros_like(out_ref)

    num_chunks = tile_rows // chunk_rows   # static

    def run(masked):
        block_row0 = (c * blocks_per_core + i) * tile_rows if masked else None

        @pl.loop(0, num_chunks)
        def _(j):
            start = pl.multiple_of(j * chunk_rows, chunk_rows)
            x = x_ref[pl.ds(start, chunk_rows), :].astype(jnp.float32)
            y = y_ref[pl.ds(start, chunk_rows), :].astype(jnp.float32)
            loss = _huber(x, y)
            if masked:
                # Rows past the real extent hold stale VMEM data (maybe
                # NaN/Inf); the select drops them.  Keep this a where/select,
                # never a multiply-by-mask.
                row = lax.broadcasted_iota(jnp.int32, loss.shape, 0)
                g = block_row0 + start + row
                loss = jnp.where(g < rows, loss, 0.0)
            # Vreg-shaped partial: pure VPU adds into the resident (8,128)
            # accumulator; the single cross-lane reduce happens in the wrapper.
            out_ref[...] += loss.reshape(-1, _SUBLANE, _LANE).sum(axis=0)

    if need_mask:
        # Only the globally-last block is partial: gate the iota/compare/select
        # off every interior block.
        is_last = jnp.logical_and(c == pl.num_programs(0) - 1,
                                  i == pl.num_programs(1) - 1)

        @pl.when(is_last)
        def _():
            run(masked=True)

        @pl.when(jnp.logical_not(is_last))
        def _():
            run(masked=False)
    else:
        run(masked=False)


def scaled_huber_loss(inp, tgt, delta=1.0, scale=2.0):
    assert inp.shape == tgt.shape, (inp.shape, tgt.shape)
    n = inp.size

    x_flat = inp.reshape(-1)
    y_flat = tgt.reshape(-1)

    rows = n // _LANE
    main = rows * _LANE

    total = jnp.float32(0.0)

    # Tail (< 128 elements): plain JAX, negligible, avoids any full-array pad.
    if main < n:
        total = total + jnp.sum(
            _huber(x_flat[main:].astype(jnp.float32),
                   y_flat[main:].astype(jnp.float32)))

    if rows > 0:
        if main < n:
            x2 = x_flat[:main].reshape(rows, _LANE)
            y2 = y_flat[:main].reshape(rows, _LANE)
        else:
            x2 = x_flat.reshape(rows, _LANE)
            y2 = y_flat.reshape(rows, _LANE)

        itemsize = jnp.dtype(inp.dtype).itemsize
        # Native sublane count for packed dtypes: 8 (f32), 16 (bf16), 32 (i8/fp8).
        native_sublanes = _SUBLANE * max(1, 4 // itemsize)

        if rows >= _BIG_TILE_ROWS:
            tile_rows = _BIG_TILE_ROWS
            chunk_rows = _CHUNK_ROWS
        else:
            tile_rows = ((rows + native_sublanes - 1)
                         // native_sublanes) * native_sublanes
            chunk_rows = tile_rows

        total_blocks = pl.cdiv(rows, tile_rows)

        # 2-way core split only when there really are 2 TensorCores per chip
        # AND it creates no phantom blocks (no clamped index map, no extra DMA).
        num_splits = 1
        if _tensorcores_per_chip() >= 2 and total_blocks % 2 == 0:
            num_splits = 2
        blocks_per_core = total_blocks // num_splits

        need_mask = (rows % tile_rows) != 0

        def in_map(c, i):
            return (c * blocks_per_core + i, 0)

        kernel = functools.partial(
            _huber_sum_kernel, rows=rows, tile_rows=tile_rows,
            chunk_rows=chunk_rows, blocks_per_core=blocks_per_core,
            need_mask=need_mask)

        partials = pl.pallas_call(
            kernel,
            out_shape=jax.ShapeDtypeStruct(
                (num_splits, _SUBLANE, _LANE), jnp.float32),
            grid_spec=pltpu.PrefetchScalarGridSpec(
                num_scalar_prefetch=0,
                grid=(num_splits, blocks_per_core),
                in_specs=[
                    pl.BlockSpec((tile_rows, _LANE), in_map),
                    pl.BlockSpec((tile_rows, _LANE), in_map),
                ],
                out_specs=pl.BlockSpec((None, _SUBLANE, _LANE),
                                       lambda c, i: (c, 0, 0)),
            ),
            compiler_params=pltpu.CompilerParams(
                dimension_semantics=("parallel", "arbitrary"),
                vmem_limit_bytes=48 * 1024 * 1024),
            cost_estimate=pl.CostEstimate(
                flops=7 * main,
                transcendentals=0,
                bytes_accessed=2 * main * itemsize),
        )(x2, y2)

        total = total + jnp.sum(partials)

    # mean + the scale/delta factor folded into a single scalar multiply.
    return total * jnp.float32(scale / (delta * n))


def _ref_loss(x, t, delta, scale):
    d = x - t
    ad = jnp.abs(d)
    l = jnp.where(ad < _BETA, 0.5 * d * d / _BETA, ad - 0.5 * _BETA)
    return jnp.mean(l / delta * scale)


if __name__ == "__main__":
    key = jax.random.PRNGKey(0)
    k1, k2, k3, k4 = jax.random.split(key, 4)

    # NCHW example input, small shapes (exercises the single aligned block path)
    x = jax.random.normal(k1, (2, 4, 16, 16), dtype=jnp.float32) * 2.0
    t = jax.random.normal(k2, (2, 4, 16, 16), dtype=jnp.float32) * 2.0
    out = jax.block_until_ready(scaled_huber_loss(x, t, delta=1.0, scale=2.0))
    ref = _ref_loss(x, t, 1.0, 2.0)
    assert jnp.allclose(out, ref, atol=1e-5, rtol=1e-5), (out, ref)

    # Second small case with a non-sublane-multiple row count + odd delta/scale
    # (exercises the masked partial-block path).
    x2 = jax.random.normal(k3, (2, 4, 129, 16), dtype=jnp.float32) * 2.0
    t2 = jax.random.normal(k4, (2, 4, 129, 16), dtype=jnp.float32) * 2.0
    out2 = jax.block_until_ready(scaled_huber_loss(x2, t2, delta=0.5, scale=3.0))
    ref2 = _ref_loss(x2, t2, 0.5, 3.0)
    assert jnp.allclose(out2, ref2, atol=1e-5, rtol=1e-5), (out2, ref2)

    print("KERNEL_OK")
</pallas_src>

<mosaic_0001>
module attributes {stable_mosaic.version = 11 : i64} {
  func.func @_huber_sum_kernel(%arg0: i32, %arg1: i32, %arg2: memref<16x128xf32, #tpu.memory_space<vmem>>, %arg3: memref<16x128xf32, #tpu.memory_space<vmem>>, %arg4: memref<1x8x128xf32, #tpu.memory_space<vmem>>) attributes {dimension_semantics = [#tpu.dimension_semantics<parallel>, #tpu.dimension_semantics<arbitrary>], iteration_bounds = array<i64: 1, 1>, scalar_prefetch = 0 : i64, scratch_operands = 0 : i64, tpu.core_type = #tpu.core_type<tc>, window_params = [{transform_indices = @transform_0, window_bounds = array<i64: 16, 128>}, {transform_indices = @transform_1, window_bounds = array<i64: 16, 128>}, {transform_indices = @transform_2, window_bounds = array<i64: 1, 8, 128>}]} {
    %c0_i32 = arith.constant 0 : i32
    %0 = arith.cmpi eq, %arg1, %c0_i32 : i32
    %1 = arith.extui %0 : i1 to i32
    %c0_i32_0 = arith.constant 0 : i32
    %2 = arith.cmpi ne, %1, %c0_i32_0 : i32
    scf.if %2 {
      %cst_13 = arith.constant 0.000000e+00 : f32
      %27 = vector.broadcast %cst_13 : f32 to vector<8x128xf32>
      %c0_14 = arith.constant 0 : index
      %c0_15 = arith.constant 0 : index
      %c0_16 = arith.constant 0 : index
      %28 = vector.load %arg4[%c0_14, %c0_15, %c0_16] : memref<1x8x128xf32, #tpu.memory_space<vmem>>, vector<1x8x128xf32>
      %29 = vector.shape_cast %28 : vector<1x8x128xf32> to vector<8x128xf32>
      %30 = vector.shape_cast %27 : vector<8x128xf32> to vector<1x8x128xf32>
      tpu.vector_store %arg4[%c0_14, %c0_15, %c0_16], %30 {strides = array<i32>} : memref<1x8x128xf32, #tpu.memory_space<vmem>>, vector<1x8x128xf32>,
    } else {
    }
    %c0_i32_1 = arith.constant 0 : i32
    %c1_i32 = arith.constant 1 : i32
    %3 = arith.muli %c0_i32_1, %c1_i32 : i32
    %c0_i32_2 = arith.constant 0 : i32
    %4 = arith.addi %c0_i32_2, %3 : i32
    %c16_i32 = arith.constant 16 : i32
    %5 = arith.muli %4, %c16_i32 : i32
    %6 = tpu.assume_multiple %5, 16 : i32
    %7 = arith.index_cast %6 : i32 to index
    %c0 = arith.constant 0 : index
    %8 = vector.load %arg2[%7, %c0] : memref<16x128xf32, #tpu.memory_space<vmem>>, vector<16x128xf32>
    %9 = arith.index_cast %6 : i32 to index
    %c0_3 = arith.constant 0 : index
    %10 = vector.load %arg3[%9, %c0_3] : memref<16x128xf32, #tpu.memory_space<vmem>>, vector<16x128xf32>
    %11 = arith.subf %8, %10 : vector<16x128xf32>
    %12 = math.absf %11 : vector<16x128xf32>
    %cst = arith.constant 1.000000e+00 : f32
    %13 = vector.broadcast %cst : f32 to vector<16x128xf32>
    %14 = arith.minimumf %12, %13 : vector<16x128xf32>
    %cst_4 = arith.constant 5.000000e-01 : f32
    %15 = vector.broadcast %cst_4 : f32 to vector<16x128xf32>
    %16 = arith.mulf %15, %14 : vector<16x128xf32>
    %17 = arith.subf %12, %16 : vector<16x128xf32>
    %18 = arith.mulf %14, %17 : vector<16x128xf32>
    %c0_5 = arith.constant 0 : index
    %c0_6 = arith.constant 0 : index
    %c0_7 = arith.constant 0 : index
    %19 = vector.load %arg4[%c0_5, %c0_6, %c0_7] : memref<1x8x128xf32, #tpu.memory_space<vmem>>, vector<1x8x128xf32>
    %20 = vector.shape_cast %19 : vector<1x8x128xf32> to vector<8x128xf32>
    %21 = vector.shape_cast %18 : vector<16x128xf32> to vector<2x8x128xf32>
    %cst_8 = arith.constant dense<0.000000e+00> : vector<8x128xf32>
    %22 = vector.multi_reduction <add>, %21, %cst_8 [0] : vector<2x8x128xf32> to vector<8x128xf32>
    %23 = arith.addf %20, %22 : vector<8x128xf32>
    %c0_9 = arith.constant 0 : index
    %c0_10 = arith.constant 0 : index
    %c0_11 = arith.constant 0 : index
    %24 = vector.load %arg4[%c0_9, %c0_10, %c0_11] : memref<1x8x128xf32, #tpu.memory_space<vmem>>, vector<1x8x128xf32>
    %25 = vector.shape_cast %24 : vector<1x8x128xf32> to vector<8x128xf32>
    %26 = vector.shape_cast %23 : vector<8x128xf32> to vector<1x8x128xf32>
    tpu.vector_store %arg4[%c0_9, %c0_10, %c0_11], %26 {strides = array<i32>} : memref<1x8x128xf32, #tpu.memory_space<vmem>>, vector<1x8x128xf32>,
    %c1_i32_12 = arith.constant 1 : i32
    return
  }
  func.func @transform_0(%arg0: i32, %arg1: i32) -> (i32, i32) {
    %c1_i32 = arith.constant 1 : i32
    %0 = arith.muli %arg0, %c1_i32 : i32
    %1 = arith.addi %0, %arg1 : i32
    %c0_i32 = arith.constant 0 : i32
    %c0_i32_0 = arith.constant 0 : i32
    return %1, %c0_i32 : i32, i32
  }
  func.func @transform_1(%arg0: i32, %arg1: i32) -> (i32, i32) {
    %c1_i32 = arith.constant 1 : i32
    %0 = arith.muli %arg0, %c1_i32 : i32
    %1 = arith.addi %0, %arg1 : i32
    %c0_i32 = arith.constant 0 : i32
    %c0_i32_0 = arith.constant 0 : i32
    return %1, %c0_i32 : i32, i32
  }
  func.func @transform_2(%arg0: i32, %arg1: i32) -> (i32, i32, i32) {
    %c0_i32 = arith.constant 0 : i32
    %c0_i32_0 = arith.constant 0 : i32
    %c0_i32_1 = arith.constant 0 : i32
    return %arg0, %c0_i32, %c0_i32_0 : i32, i32, i32
  }
}

</mosaic_0001>

<bundles_post_ra>
// kernel: tpu_custom_call.1
= control target key start
LH: loop header
LB: loop body
LE: loop exit
PB: predicated region body
PF: predicated region fallthrough
CT: control target
= control target key end

     0   :  { %7 = vsyncpa [#allocation3], 0  ;;  %s194_s0 = inlined_call_operand.hbm [shape: f32[16,128], index: 0, kind: input, shape index: {}]   ;;  %s195_s1 = inlined_call_operand.hbm [shape: f32[16,128], index: 1, kind: input, shape index: {}]   ;;  %s196_s2 = inlined_call_operand.hbm [shape: f32[1,8,128], index: 2, kind: output, shape index: {}]  }
   0x1   :  { %8 = vsyncpa [#allocation6], 0 }
   0x2   :  { %9 = vsyncpa [#allocation4], 0  ;;  %s165_s9 = smov [#allocation2]  }
   0x3   :  { %s19_s10 = sshll.u32 %s165_s9, 4  ;;  %s20_s10 = int_to_ptr.vmem [resolvable:$true] %s19_s10 }
   0x4   :  { %s107_s11 = scalar_lea.vmem %s20_s10, 256  ;;  %p112_p1 = scmp.lt.s32.totalorder %s20_s10, %s20_s10 }
   0x5   :  { %p108_p0 = scmp.ne.s32.totalorder %s20_s10, %s107_s11  ;;  %p113_p2 = scmp.lt.s32.totalorder %s107_s11, %s107_s11 }
   0x7   :  { %p114_p3 = por %p113_p2, %p112_p1 }
   0x9   :  { %p115_p4 = pnand %p114_p3, %p108_p0 }
   0xb   :  { %118 = shalt.err (!%p115_p4)
}
   0xc   :  { %s166_s12 = smov 128   ;;  %s167_s13 = smov 8  }
   0xd   :  { %25 = dma.hbm_to_vmem [thread:$0]  %s194_s0, 256, %s20_s10, [#allocation3], %s166_s12, %s166_s12, %s167_s13  }
   0xe   :  { %s168_s16 = smov [#allocation5]  }
   0xf   :  { %s35_s17 = sshll.u32 %s168_s16, 4  ;;  %s36_s17 = int_to_ptr.vmem [resolvable:$true] %s35_s17 }
  0x10   :  { %s127_s18 = scalar_lea.vmem %s36_s17, 256  ;;  %p132_p6 = scmp.lt.s32.totalorder %s36_s17, %s36_s17 }
  0x11   :  { %p128_p5 = scmp.ne.s32.totalorder %s36_s17, %s127_s18  ;;  %p133_p7 = scmp.lt.s32.totalorder %s127_s18, %s127_s18 }
  0x13   :  { %p134_p8 = por %p133_p7, %p132_p6 }
  0x15   :  { %p135_p9 = pnand %p134_p8, %p128_p5 }
  0x17   :  { %138 = shalt.err (!%p135_p9)
}
  0x18   :  { %41 = dma.hbm_to_vmem [thread:$0]  %s195_s1, 256, %s36_s17, [#allocation6], %s166_s12, %s166_s12, %s167_s13  }
  0x19   :  { %159 = dma.done.wait [#allocation3], 256  }
  0x1a   :  { %160 = vsyncadd [#allocation3], 4294967040 }
  0x1b   :  { %161 = dma.done.wait [#allocation6], 256  }
  0x1c   :  { %162 = vsyncadd [#allocation6], 4294967040  ;;  %v57_v0 = vld [vmem:[#allocation2] sm:$0xff]  ;;  %v58_v1 = vld [vmem:[#allocation2 + $0x8] sm:$0xff]  ;;  %s169_s0 = smov [#allocation7]  }
  0x1d   :  { %v59_v2 = vld [vmem:[#allocation5] sm:$0xff]  ;;  %v60_v3 = vld [vmem:[#allocation5 + $0x8] sm:$0xff]  ;;  %s83_s1 = sshll.u32 %s169_s0, 4  ;;  %s84_s1 = int_to_ptr.vmem [resolvable:$true] %s83_s1 }
  0x1e   :  { %v61_v4 = vsub.f32 %v57_v0, %v59_v2  ;;  %v62_v5 = vsub.f32 %v58_v1, %v60_v3  ;;  %s139_s21 = scalar_lea.vmem %s84_s1, 128  ;;  %p144_p11 = scmp.lt.s32.totalorder %s84_s1, %s84_s1 }
  0x1f   :  { %p140_p10 = scmp.ne.s32.totalorder %s84_s1, %s139_s21  ;;  %p145_p12 = scmp.lt.s32.totalorder %s139_s21, %s139_s21 }
  0x20   :  { %v63_v6 = vand.u32 2147483647, %v61_v4  ;;  %v64_v7 = vand.u32 2147483647, %v62_v5 }
  0x21   :  { %p146_p13 = por %p145_p12, %p144_p11 }
  0x22   :  { %v65_v8 = vmin.f32 %v63_v6, 1.0  ;;  %v66_v9 = vmin.f32 %v64_v7, 1.0 }
  0x23   :  { %p147_p0 = pnand %p146_p13, %p140_p10 }
  0x24   :  { %v67_v10 = vmul.f32 0.5, %v65_v8  ;;  %v68_v11 = vmul.f32 0.5, %v66_v9 }
  0x26   :  { %v69_v12 = vsub.f32 %v63_v6, %v67_v10  ;;  %v70_v13 = vsub.f32 %v64_v7, %v68_v11 }
  0x28   :  { %v71_v14 = vmul.f32 %v69_v12, %v65_v8  ;;  %v72_v15 = vmul.f32 %v70_v13, %v66_v9 }
  0x2a   :  { %v74_v16 = vadd.f32 %v72_v15, %v71_v14 }
  0x2c   :  { %76 = vst [vmem:[#allocation7] sm:$0xff] %v74_v16 }
  0x2d   :  { %150 = shalt.err (!%p147_p0)
}
  0x2e   :  { %86 = dma.vmem_to_hbm [thread:$0]  %s84_s1, 128, %s196_s2, [#allocation4]  }
  0x2f   :  { %163 = dma.done.wait [#allocation4], 128  }
  0x30   :  { %164 = vsyncadd [#allocation4], 4294967168 }
  0x31   :  { %90 = vsyncpa [#allocation3], 1 }
  0x32   :  { %91 = vsyncpa [#allocation6], 1 }
  0x33   :  { %92 = vsyncpa [#allocation4], 1 }

</bundles_post_ra>
